<compile_context>
chip_gen: v7x
topology: tpu7x:2x2x1
jax: 0.10.0
libtpu: 0.0.40
codegen_flags: <defaults>
</compile_context>

<pallas_src>
import jax
import jax.numpy as jnp
import numpy as np
from jax.experimental import pallas as pl
from jax.experimental.pallas import tpu as pltpu


# --------------------------------------------------------------------------
# Fused HGATLayer kernel: ra1 + residual + ra2 + residual for one batch block.
# --------------------------------------------------------------------------
def _hgat_kernel(x_ref, p_ref, mask_ref, slab_ref, wv_ref, bg_ref,
                 xo_ref, po_ref):
    f32 = jnp.float32
    x = x_ref[...].astype(f32)            # (Bt, Lx, H)  ra1 queries / ra2 keys
    p = p_ref[...].astype(f32)            # (Bt, Lp, H)  ra1 keys   / ra2 queries
    slab = slab_ref[...].astype(f32)      # (8, H) packed small params:
    # rows: 0 ck1, 1 bv1, 2 wgo1, 3 wgq1, 4 ck2, 5 bv2, 6 wgo2, 7 wgq2

    def row2(i):                           # (1, H)   — broadcast vs (Bt, H)
        return slab[i:i + 1]

    def row3(i):                           # (1, 1, H) — broadcast vs (Bt, L, H)
        return slab[i:i + 1][None]

    # ---------------- ra1: queries = x, keys/values = p, no mask -----------
    # Attention is query-independent (softmax fold): one row per batch elem.
    s1 = jnp.sum(p * row3(0), axis=-1)                               # (Bt, Lp)
    s1 = s1 - jnp.max(s1, axis=-1, keepdims=True)
    e1 = jnp.exp(s1)
    attn1 = e1 * pl.reciprocal(jnp.sum(e1, axis=-1, keepdims=True),
                               approx=True)                          # (Bt, Lp)
    # Value projection AFTER pooling (exact by linearity): no (Bt*Lp,H) matmul.
    pool1 = jnp.sum(attn1[..., None] * p, axis=1)                    # (Bt, H)
    ctx1 = jnp.dot(pool1, wv_ref[0], preferred_element_type=f32) + row2(1)

    # Rank-1 gate projections on VPU/XLU (broadcast-mul + lane reduce).
    gs1 = jnp.sum(ctx1 * row2(2), axis=-1, keepdims=True)            # (Bt, 1)
    gx1 = jnp.sum(x * row3(3), axis=-1, keepdims=True)               # (Bt, Lx, 1)
    g1 = jax.nn.sigmoid(gx1 + gs1[:, None, :] + bg_ref[0])

    # RA output + HGAT residual fold:  g*(ctx+x) + (1-g)*x + x = g*ctx + 2x
    x_new = g1 * ctx1[:, None, :] + 2.0 * x                          # (Bt, Lx, H)
    # NOTE: with H < 128 this store is a masked vst; for large models pad H to
    # a multiple of 128 (or present a lane-dense (Bt, L*H) output view).
    xo_ref[...] = x_new.astype(xo_ref.dtype)

    # ---------------- ra2: queries = p, keys/values = x_new, masked --------
    m = mask_ref[...][:, 0, :]                                       # (Bt, Lx) {0,1}
    nb = mask_ref[...][:, 1, :]                                      # (Bt, Lx) (1-m)*(-1e9)
    s2 = jnp.sum(x_new * row3(4), axis=-1)                           # (Bt, Lx)
    s2 = s2 * m + nb          # == masked_fill(-1e9): mul+add, no compare/select
    s2 = s2 - jnp.max(s2, axis=-1, keepdims=True)
    e2 = jnp.exp(s2)
    attn2 = e2 * pl.reciprocal(jnp.sum(e2, axis=-1, keepdims=True),
                               approx=True)                          # (Bt, Lx)
    pool2 = jnp.sum(attn2[..., None] * x_new, axis=1)                # (Bt, H)
    ctx2 = jnp.dot(pool2, wv_ref[1], preferred_element_type=f32) + row2(5)

    gs2 = jnp.sum(ctx2 * row2(6), axis=-1, keepdims=True)            # (Bt, 1)
    gp2 = jnp.sum(p * row3(7), axis=-1, keepdims=True)               # (Bt, Lp, 1)
    g2 = jax.nn.sigmoid(gp2 + gs2[:, None, :] + bg_ref[1])

    p_new = g2 * ctx2[:, None, :] + 2.0 * p                          # (Bt, Lp, H)
    po_ref[...] = p_new.astype(po_ref.dtype)


# --------------------------------------------------------------------------
# Host-side exact weight fusion + operand packing.
# --------------------------------------------------------------------------
def fuse_hgat_params(pr1, pr2):
    H = pr1["wk"].shape[0]

    def rows(pr):
        ck = (pr["wk"] @ pr["wsk"]).reshape(H)     # key-score direction (q,bk,bs cancel)
        bv = pr["bv"].reshape(H)
        wgo = pr["wgo"].reshape(H)                 # gate: ctx term
        wgq = (pr["wgo"] + pr["wgp"]).reshape(H)   # gate: query term (fold of out=ctx+p)
        return [ck, bv, wgo, wgq]

    slab = jnp.stack(rows(pr1) + rows(pr2), axis=0).astype(jnp.float32)   # (8, H)
    wv = jnp.stack([pr1["wv"], pr2["wv"]], axis=0).astype(jnp.float32)    # (2, H, H)
    bg = jnp.concatenate([pr1["bg"].reshape(1),
                          pr2["bg"].reshape(1)]).astype(jnp.float32)      # (2,) SMEM
    return slab, wv, bg


def _pick_block_b(B, Lx, Lp, H, itemsize=4, vmem_budget_bytes=8 << 20):
    """Batch elements per grid step.

    Per-step pipeline footprint ~= 2 buffers * (x_in + p_in + x_out + p_out)
    = 4 * block_b * (Lx + Lp) * H * itemsize (grid-invariant weights are tiny).
    Prefer the largest block_b that fits a conservative budget (the grid is a
    serial loop with ~0.35us/step on 1-TC v5e/v6e, and fatter blocks fill MXU
    sublanes / widen DMAs); split into >=2 grid steps for the v7x megacore
    only when each step still keeps >=256 rows of work.  Re-derive the budget
    against 64 MiB physical VMEM (v7x) if sizes grow, and raise
    vmem_limit_bytes via pltpu.CompilerParams when exceeding the scoped limit.
    """
    per_b = 4 * (Lx + Lp) * H * itemsize
    cap = max(1, vmem_budget_bytes // max(per_b, 1))
    divisors = [d for d in range(1, B + 1) if B % d == 0]
    fitting = [d for d in divisors if d <= cap]
    block_b = max(fitting) if fitting else 1
    if block_b == B and B > 1:
        smaller = [d for d in divisors if d < B]
        if smaller:
            cand = max(smaller)
            if cand * max(Lx, Lp) >= 256:      # megacore split only if still fat
                block_b = cand
    return block_b


def hgat_layer(x, p, mask, params1, params2, *, block_b=None):
    """HGATLayer.forward: x (B, Lx, H), p (B, Lp, H), mask (B, Lx) in {0,1}."""
    B, Lx, H = x.shape
    _, Lp, _ = p.shape
    if block_b is None:
        block_b = _pick_block_b(B, Lx, Lp, H, jnp.dtype(x.dtype).itemsize)
    assert B % block_b == 0

    slab, wv, bg = fuse_hgat_params(params1, params2)

    # Mask pack: row 0 multiplicative {0,1}, row 1 additive (1-m)*(-1e9).
    mask_f = mask.astype(jnp.float32)
    mask_pack = jnp.stack([mask_f, (1.0 - mask_f) * jnp.float32(-1e9)],
                          axis=1)                                     # (B, 2, Lx)

    # For bf16 deployments (v6e/v7x): cast x/p/wv to bf16 here (HBM I/O + MXU),
    # keep kernel-internal softmax/sigmoid math in f32.
    seq_spec = lambda L: pl.BlockSpec((block_b, L, H), lambda b: (b, 0, 0))
    in_specs = [
        seq_spec(Lx),                                           # x
        seq_spec(Lp),                                           # p
        pl.BlockSpec((block_b, 2, Lx), lambda b: (b, 0, 0)),    # mask pack
        pl.BlockSpec((8, H), lambda b: (0, 0)),                 # packed small params
        pl.BlockSpec((2, H, H), lambda b: (0, 0, 0)),           # stacked wv1/wv2
        pl.BlockSpec(memory_space=pltpu.MemorySpace.SMEM),      # gate biases (2,)
    ]
    # For large H, single-buffer the two constant-weight specs above
    # (pipeline_mode=pl.Buffered(1)) to halve their VMEM under v7x's 64 MiB.
    out_specs = (seq_spec(Lx), seq_spec(Lp))
    out_shape = (jax.ShapeDtypeStruct((B, Lx, H), x.dtype),
                 jax.ShapeDtypeStruct((B, Lp, H), p.dtype))

    x_new, p_new = pl.pallas_call(
        _hgat_kernel,
        grid=(B // block_b,),
        in_specs=in_specs,
        out_specs=out_specs,
        out_shape=out_shape,
        input_output_aliases={0: 0, 1: 1},      # x -> x_new, p -> p_new
        compiler_params=pltpu.CompilerParams(
            dimension_semantics=("parallel",)),
    )(x, p, mask_pack, slab, wv, bg)
    return x_new, p_new


# --------------------------------------------------------------------------
# Deterministic parameter init (same shapes/semantics as nn.Linear layers).
# --------------------------------------------------------------------------
def make_ra_params(key, H):
    ks = jax.random.split(key, 10)
    s = 1.0 / np.sqrt(H)
    return {
        "wq": jax.random.uniform(ks[0], (H, H), jnp.float32, -s, s),
        "bq": jax.random.uniform(ks[1], (1, H), jnp.float32, -s, s),
        "wk": jax.random.uniform(ks[2], (H, H), jnp.float32, -s, s),
        "bk": jax.random.uniform(ks[3], (1, H), jnp.float32, -s, s),
        "wv": jax.random.uniform(ks[4], (H, H), jnp.float32, -s, s),
        "bv": jax.random.uniform(ks[5], (1, H), jnp.float32, -s, s),
        "wsq": jax.random.uniform(ks[6], (H, 1), jnp.float32, -s, s),
        "wsk": jax.random.uniform(ks[7], (H, 1), jnp.float32, -s, s),
        "bs": jnp.full((1, 1), 0.01, jnp.float32),
        "wgo": jax.random.uniform(ks[8], (H, 1), jnp.float32, -s, s),
        "wgp": jax.random.uniform(ks[9], (H, 1), jnp.float32, -s, s),
        "bg": jnp.full((1, 1), -0.02, jnp.float32),
    }


# --------------------------------------------------------------------------
# Pure-JAX reference (mirrors the PyTorch forward, unfused) for validation.
# --------------------------------------------------------------------------
def _ra_ref(p, x, mask, pr):
    q = p @ pr["wq"] + pr["bq"]
    k = x @ pr["wk"] + pr["bk"]
    score = (q @ pr["wsq"]) + jnp.swapaxes(k @ pr["wsk"], 1, 2) + pr["bs"]
    if mask is not None:
        score = jnp.where(mask[:, None, :] < 0.5, -1e9, score)
    attn = jax.nn.softmax(score, axis=2)
    v = x @ pr["wv"] + pr["bv"]
    out = jnp.einsum("bcl,bld->bcd", attn, v) + p
    g = jax.nn.sigmoid((out @ pr["wgo"]) + (p @ pr["wgp"]) + pr["bg"])
    return g * out + (1.0 - g) * p


def _hgat_ref(x, p, mask, pr1, pr2):
    x = _ra_ref(x, p, None, pr1) + x
    p = _ra_ref(p, x, mask, pr2) + p
    return x, p


# --------------------------------------------------------------------------
if __name__ == "__main__":
    B, Lx, Lp, H = 2, 8, 8, 32
    key = jax.random.PRNGKey(0)
    kx, kp, k1, k2 = jax.random.split(key, 4)

    x = jax.random.normal(kx, (B, Lx, H), jnp.float32)
    p = jax.random.normal(kp, (B, Lp, H), jnp.float32)
    # mask over x positions (used only in ra2): 1 = valid, 0 = masked.
    mask = jnp.concatenate(
        [jnp.ones((B, Lx - 3), jnp.float32),
         jnp.array([[1.0, 1.0, 1.0], [0.0, 0.0, 1.0]], jnp.float32)], axis=1)

    params1 = make_ra_params(k1, H)
    params2 = make_ra_params(k2, H)

    run = jax.jit(hgat_layer)
    x_out, p_out = run(x, p, mask, params1, params2)
    jax.block_until_ready((x_out, p_out))

    x_ref, p_ref = _hgat_ref(x, p, mask, params1, params2)
    # Tolerance covers the EUP approximate-reciprocal softmax normalization
    # (pl.reciprocal(approx=True)); with approx=False this matches at 1e-4.
    np.testing.assert_allclose(np.asarray(x_out), np.asarray(x_ref),
                               rtol=5e-3, atol=5e-3)
    np.testing.assert_allclose(np.asarray(p_out), np.asarray(p_ref),
                               rtol=5e-3, atol=5e-3)

    print("KERNEL_OK")
</pallas_src>

<mosaic_0001>
module attributes {stable_mosaic.version = 11 : i64} {
  func.func @_hgat_kernel(%arg0: i32, %arg1: memref<2x8x32xf32, #tpu.memory_space<vmem>>, %arg2: memref<2x8x32xf32, #tpu.memory_space<vmem>>, %arg3: memref<2x2x8xf32, #tpu.memory_space<vmem>>, %arg4: memref<8x32xf32, #tpu.memory_space<vmem>>, %arg5: memref<2x32x32xf32, #tpu.memory_space<vmem>>, %arg6: memref<2xf32, #tpu.memory_space<smem>>, %arg7: memref<2x8x32xf32, #tpu.memory_space<vmem>>, %arg8: memref<2x8x32xf32, #tpu.memory_space<vmem>>) attributes {dimension_semantics = [#tpu.dimension_semantics<parallel>], iteration_bounds = array<i64: 1>, scalar_prefetch = 0 : i64, scratch_operands = 0 : i64, tpu.core_type = #tpu.core_type<tc>, window_params = [{transform_indices = @transform_0, window_bounds = array<i64: 2, 8, 32>}, {transform_indices = @transform_1, window_bounds = array<i64: 2, 8, 32>}, {transform_indices = @transform_2, window_bounds = array<i64: 2, 2, 8>}, {pipeline_mode = #tpu.pipeline_mode<synchronous>, transform_indices = @transform_3, window_bounds = array<i64: 8, 32>}, {pipeline_mode = #tpu.pipeline_mode<synchronous>, transform_indices = @transform_4, window_bounds = array<i64: 2, 32, 32>}, {transform_indices = @transform_5, window_bounds = array<i64: 2>}, {transform_indices = @transform_6, window_bounds = array<i64: 2, 8, 32>}, {transform_indices = @transform_7, window_bounds = array<i64: 2, 8, 32>}]} {
    %c0 = arith.constant 0 : index
    %c0_0 = arith.constant 0 : index
    %c0_1 = arith.constant 0 : index
    %0 = vector.load %arg1[%c0, %c0_0, %c0_1] : memref<2x8x32xf32, #tpu.memory_space<vmem>>, vector<2x8x32xf32>
    %c0_2 = arith.constant 0 : index
    %c0_3 = arith.constant 0 : index
    %c0_4 = arith.constant 0 : index
    %1 = vector.load %arg2[%c0_2, %c0_3, %c0_4] : memref<2x8x32xf32, #tpu.memory_space<vmem>>, vector<2x8x32xf32>
    %c0_5 = arith.constant 0 : index
    %c0_6 = arith.constant 0 : index
    %2 = vector.load %arg4[%c0_5, %c0_6] : memref<8x32xf32, #tpu.memory_space<vmem>>, vector<8x32xf32>
    %3 = vector.extract_strided_slice %2 {offsets = [0, 0], sizes = [1, 32], strides = [1, 1]} : vector<8x32xf32> to vector<1x32xf32>
    %4 = vector.shape_cast %3 : vector<1x32xf32> to vector<1x1x32xf32>
    %5 = vector.broadcast %4 : vector<1x1x32xf32> to vector<2x8x32xf32>
    %6 = arith.mulf %1, %5 : vector<2x8x32xf32>
    %cst = arith.constant dense<0.000000e+00> : vector<2x8xf32>
    %7 = vector.multi_reduction <add>, %6, %cst [2] : vector<2x8x32xf32> to vector<2x8xf32>
    %cst_7 = arith.constant dense<0xFF800000> : vector<2xf32>
    %8 = vector.multi_reduction <maximumf>, %7, %cst_7 [1] : vector<2x8xf32> to vector<2xf32>
    %9 = vector.shape_cast %8 : vector<2xf32> to vector<2x1xf32>
    %10 = vector.broadcast %9 : vector<2x1xf32> to vector<2x8xf32>
    %11 = arith.subf %7, %10 : vector<2x8xf32>
    %12 = math.exp %11 : vector<2x8xf32>
    %cst_8 = arith.constant dense<0.000000e+00> : vector<2xf32>
    %13 = vector.multi_reduction <add>, %12, %cst_8 [1] : vector<2x8xf32> to vector<2xf32>
    %14 = vector.shape_cast %13 : vector<2xf32> to vector<2x1xf32>
    %15 = tpu.reciprocal %14 {approx = true} : vector<2x1xf32> -> vector<2x1xf32>
    %16 = vector.broadcast %15 : vector<2x1xf32> to vector<2x8xf32>
    %17 = arith.mulf %12, %16 : vector<2x8xf32>
    %18 = vector.shape_cast %17 : vector<2x8xf32> to vector<2x8x1xf32>
    %19 = vector.broadcast %18 : vector<2x8x1xf32> to vector<2x8x32xf32>
    %20 = arith.mulf %19, %1 : vector<2x8x32xf32>
    %cst_9 = arith.constant dense<0.000000e+00> : vector<2x32xf32>
    %21 = vector.multi_reduction <add>, %20, %cst_9 [1] : vector<2x8x32xf32> to vector<2x32xf32>
    %c0_10 = arith.constant 0 : index
    %c0_11 = arith.constant 0 : index
    %c0_12 = arith.constant 0 : index
    %22 = vector.load %arg5[%c0_10, %c0_11, %c0_12] : memref<2x32x32xf32, #tpu.memory_space<vmem>>, vector<1x32x32xf32>
    %23 = vector.shape_cast %22 : vector<1x32x32xf32> to vector<32x32xf32>
    %cst_13 = arith.constant dense<0.000000e+00> : vector<2x32xf32>
    %24 = tpu.matmul %21, %23, %cst_13 {dimension_numbers = #tpu.dot_dimension_numbers<[1], [0], [0], [1], [0, 0, 1, 1], [], []>} : vector<2x32xf32>, vector<32x32xf32>, vector<2x32xf32> -> vector<2x32xf32>
    %25 = vector.extract_strided_slice %2 {offsets = [1, 0], sizes = [1, 32], strides = [1, 1]} : vector<8x32xf32> to vector<1x32xf32>
    %26 = vector.broadcast %25 : vector<1x32xf32> to vector<2x32xf32>
    %27 = arith.addf %24, %26 : vector<2x32xf32>
    %28 = vector.extract_strided_slice %2 {offsets = [2, 0], sizes = [1, 32], strides = [1, 1]} : vector<8x32xf32> to vector<1x32xf32>
    %29 = vector.broadcast %28 : vector<1x32xf32> to vector<2x32xf32>
    %30 = arith.mulf %27, %29 : vector<2x32xf32>
    %cst_14 = arith.constant dense<0.000000e+00> : vector<2xf32>
    %31 = vector.multi_reduction <add>, %30, %cst_14 [1] : vector<2x32xf32> to vector<2xf32>
    %32 = vector.shape_cast %31 : vector<2xf32> to vector<2x1xf32>
    %33 = vector.extract_strided_slice %2 {offsets = [3, 0], sizes = [1, 32], strides = [1, 1]} : vector<8x32xf32> to vector<1x32xf32>
    %34 = vector.shape_cast %33 : vector<1x32xf32> to vector<1x1x32xf32>
    %35 = vector.broadcast %34 : vector<1x1x32xf32> to vector<2x8x32xf32>
    %36 = arith.mulf %0, %35 : vector<2x8x32xf32>
    %cst_15 = arith.constant dense<0.000000e+00> : vector<2x8xf32>
    %37 = vector.multi_reduction <add>, %36, %cst_15 [2] : vector<2x8x32xf32> to vector<2x8xf32>
    %38 = vector.shape_cast %37 : vector<2x8xf32> to vector<2x8x1xf32>
    %39 = vector.shape_cast %32 : vector<2x1xf32> to vector<2x1x1xf32>
    %40 = vector.broadcast %39 : vector<2x1x1xf32> to vector<2x8x1xf32>
    %41 = arith.addf %38, %40 : vector<2x8x1xf32>
    %c0_16 = arith.constant 0 : index
    %42 = memref.load %arg6[%c0_16] : memref<2xf32, #tpu.memory_space<smem>>
    %43 = vector.broadcast %42 : f32 to vector<2x8x1xf32>
    %44 = arith.addf %41, %43 : vector<2x8x1xf32>
    %45 = arith.negf %44 : vector<2x8x1xf32>
    %46 = math.exp %45 : vector<2x8x1xf32>
    %cst_17 = arith.constant 1.000000e+00 : f32
    %47 = vector.broadcast %cst_17 : f32 to vector<2x8x1xf32>
    %48 = arith.addf %47, %46 : vector<2x8x1xf32>
    %49 = arith.divf %47, %48 : vector<2x8x1xf32>
    %50 = vector.shape_cast %27 : vector<2x32xf32> to vector<2x1x32xf32>
    %51 = vector.broadcast %49 : vector<2x8x1xf32> to vector<2x8x32xf32>
    %52 = vector.broadcast %50 : vector<2x1x32xf32> to vector<2x8x32xf32>
    %53 = arith.mulf %51, %52 : vector<2x8x32xf32>
    %cst_18 = arith.constant 2.000000e+00 : f32
    %54 = vector.broadcast %cst_18 : f32 to vector<2x8x32xf32>
    %55 = arith.mulf %54, %0 : vector<2x8x32xf32>
    %56 = arith.addf %53, %55 : vector<2x8x32xf32>
    %c0_19 = arith.constant 0 : index
    %c0_20 = arith.constant 0 : index
    %c0_21 = arith.constant 0 : index
    %57 = vector.load %arg7[%c0_19, %c0_20, %c0_21] : memref<2x8x32xf32, #tpu.memory_space<vmem>>, vector<2x8x32xf32>
    tpu.vector_store %arg7[%c0_19, %c0_20, %c0_21], %56 {strides = array<i32>} : memref<2x8x32xf32, #tpu.memory_space<vmem>>, vector<2x8x32xf32>,
    %c0_22 = arith.constant 0 : index
    %c0_23 = arith.constant 0 : index
    %c0_24 = arith.constant 0 : index
    %58 = vector.load %arg3[%c0_22, %c0_23, %c0_24] : memref<2x2x8xf32, #tpu.memory_space<vmem>>, vector<2x2x8xf32>
    %59 = vector.extract_strided_slice %58 {offsets = [0, 0, 0], sizes = [2, 1, 8], strides = [1, 1, 1]} : vector<2x2x8xf32> to vector<2x1x8xf32>
    %60 = vector.shape_cast %59 : vector<2x1x8xf32> to vector<2x8xf32>
    %c0_25 = arith.constant 0 : index
    %c0_26 = arith.constant 0 : index
    %c0_27 = arith.constant 0 : index
    %61 = vector.load %arg3[%c0_25, %c0_26, %c0_27] : memref<2x2x8xf32, #tpu.memory_space<vmem>>, vector<2x2x8xf32>
    %62 = vector.extract_strided_slice %61 {offsets = [0, 1, 0], sizes = [2, 1, 8], strides = [1, 1, 1]} : vector<2x2x8xf32> to vector<2x1x8xf32>
    %63 = vector.shape_cast %62 : vector<2x1x8xf32> to vector<2x8xf32>
    %64 = vector.extract_strided_slice %2 {offsets = [4, 0], sizes = [1, 32], strides = [1, 1]} : vector<8x32xf32> to vector<1x32xf32>
    %65 = vector.shape_cast %64 : vector<1x32xf32> to vector<1x1x32xf32>
    %66 = vector.broadcast %65 : vector<1x1x32xf32> to vector<2x8x32xf32>
    %67 = arith.mulf %56, %66 : vector<2x8x32xf32>
    %cst_28 = arith.constant dense<0.000000e+00> : vector<2x8xf32>
    %68 = vector.multi_reduction <add>, %67, %cst_28 [2] : vector<2x8x32xf32> to vector<2x8xf32>
    %69 = arith.mulf %68, %60 : vector<2x8xf32>
    %70 = arith.addf %69, %63 : vector<2x8xf32>
    %cst_29 = arith.constant dense<0xFF800000> : vector<2xf32>
    %71 = vector.multi_reduction <maximumf>, %70, %cst_29 [1] : vector<2x8xf32> to vector<2xf32>
    %72 = vector.shape_cast %71 : vector<2xf32> to vector<2x1xf32>
    %73 = vector.broadcast %72 : vector<2x1xf32> to vector<2x8xf32>
    %74 = arith.subf %70, %73 : vector<2x8xf32>
    %75 = math.exp %74 : vector<2x8xf32>
    %cst_30 = arith.constant dense<0.000000e+00> : vector<2xf32>
    %76 = vector.multi_reduction <add>, %75, %cst_30 [1] : vector<2x8xf32> to vector<2xf32>
    %77 = vector.shape_cast %76 : vector<2xf32> to vector<2x1xf32>
    %78 = tpu.reciprocal %77 {approx = true} : vector<2x1xf32> -> vector<2x1xf32>
    %79 = vector.broadcast %78 : vector<2x1xf32> to vector<2x8xf32>
    %80 = arith.mulf %75, %79 : vector<2x8xf32>
    %81 = vector.shape_cast %80 : vector<2x8xf32> to vector<2x8x1xf32>
    %82 = vector.broadcast %81 : vector<2x8x1xf32> to vector<2x8x32xf32>
    %83 = arith.mulf %82, %56 : vector<2x8x32xf32>
    %cst_31 = arith.constant dense<0.000000e+00> : vector<2x32xf32>
    %84 = vector.multi_reduction <add>, %83, %cst_31 [1] : vector<2x8x32xf32> to vector<2x32xf32>
    %c1 = arith.constant 1 : index
    %c0_32 = arith.constant 0 : index
    %c0_33 = arith.constant 0 : index
    %85 = vector.load %arg5[%c1, %c0_32, %c0_33] : memref<2x32x32xf32, #tpu.memory_space<vmem>>, vector<1x32x32xf32>
    %86 = vector.shape_cast %85 : vector<1x32x32xf32> to vector<32x32xf32>
    %cst_34 = arith.constant dense<0.000000e+00> : vector<2x32xf32>
    %87 = tpu.matmul %84, %86, %cst_34 {dimension_numbers = #tpu.dot_dimension_numbers<[1], [0], [0], [1], [0, 0, 1, 1], [], []>} : vector<2x32xf32>, vector<32x32xf32>, vector<2x32xf32> -> vector<2x32xf32>
    %88 = vector.extract_strided_slice %2 {offsets = [5, 0], sizes = [1, 32], strides = [1, 1]} : vector<8x32xf32> to vector<1x32xf32>
    %89 = vector.broadcast %88 : vector<1x32xf32> to vector<2x32xf32>
    %90 = arith.addf %87, %89 : vector<2x32xf32>
    %91 = vector.extract_strided_slice %2 {offsets = [6, 0], sizes = [1, 32], strides = [1, 1]} : vector<8x32xf32> to vector<1x32xf32>
    %92 = vector.broadcast %91 : vector<1x32xf32> to vector<2x32xf32>
    %93 = arith.mulf %90, %92 : vector<2x32xf32>
    %cst_35 = arith.constant dense<0.000000e+00> : vector<2xf32>
    %94 = vector.multi_reduction <add>, %93, %cst_35 [1] : vector<2x32xf32> to vector<2xf32>
    %95 = vector.shape_cast %94 : vector<2xf32> to vector<2x1xf32>
    %96 = vector.extract_strided_slice %2 {offsets = [7, 0], sizes = [1, 32], strides = [1, 1]} : vector<8x32xf32> to vector<1x32xf32>
    %97 = vector.shape_cast %96 : vector<1x32xf32> to vector<1x1x32xf32>
    %98 = vector.broadcast %97 : vector<1x1x32xf32> to vector<2x8x32xf32>
    %99 = arith.mulf %1, %98 : vector<2x8x32xf32>
    %cst_36 = arith.constant dense<0.000000e+00> : vector<2x8xf32>
    %100 = vector.multi_reduction <add>, %99, %cst_36 [2] : vector<2x8x32xf32> to vector<2x8xf32>
    %101 = vector.shape_cast %100 : vector<2x8xf32> to vector<2x8x1xf32>
    %102 = vector.shape_cast %95 : vector<2x1xf32> to vector<2x1x1xf32>
    %103 = vector.broadcast %102 : vector<2x1x1xf32> to vector<2x8x1xf32>
    %104 = arith.addf %101, %103 : vector<2x8x1xf32>
    %c1_37 = arith.constant 1 : index
    %105 = memref.load %arg6[%c1_37] : memref<2xf32, #tpu.memory_space<smem>>
    %106 = vector.broadcast %105 : f32 to vector<2x8x1xf32>
    %107 = arith.addf %104, %106 : vector<2x8x1xf32>
    %108 = arith.negf %107 : vector<2x8x1xf32>
    %109 = math.exp %108 : vector<2x8x1xf32>
    %cst_38 = arith.constant 1.000000e+00 : f32
    %110 = vector.broadcast %cst_38 : f32 to vector<2x8x1xf32>
    %111 = arith.addf %110, %109 : vector<2x8x1xf32>
    %112 = arith.divf %110, %111 : vector<2x8x1xf32>
    %113 = vector.shape_cast %90 : vector<2x32xf32> to vector<2x1x32xf32>
    %114 = vector.broadcast %112 : vector<2x8x1xf32> to vector<2x8x32xf32>
    %115 = vector.broadcast %113 : vector<2x1x32xf32> to vector<2x8x32xf32>
    %116 = arith.mulf %114, %115 : vector<2x8x32xf32>
    %cst_39 = arith.constant 2.000000e+00 : f32
    %117 = vector.broadcast %cst_39 : f32 to vector<2x8x32xf32>
    %118 = arith.mulf %117, %1 : vector<2x8x32xf32>
    %119 = arith.addf %116, %118 : vector<2x8x32xf32>
    %c0_40 = arith.constant 0 : index
    %c0_41 = arith.constant 0 : index
    %c0_42 = arith.constant 0 : index
    %120 = vector.load %arg8[%c0_40, %c0_41, %c0_42] : memref<2x8x32xf32, #tpu.memory_space<vmem>>, vector<2x8x32xf32>
    tpu.vector_store %arg8[%c0_40, %c0_41, %c0_42], %119 {strides = array<i32>} : memref<2x8x32xf32, #tpu.memory_space<vmem>>, vector<2x8x32xf32>,
    return
  }
  func.func @transform_0(%arg0: i32) -> (i32, i32, i32) {
    %c0_i32 = arith.constant 0 : i32
    %c0_i32_0 = arith.constant 0 : i32
    %c0_i32_1 = arith.constant 0 : i32
    return %arg0, %c0_i32, %c0_i32_0 : i32, i32, i32
  }
  func.func @transform_1(%arg0: i32) -> (i32, i32, i32) {
    %c0_i32 = arith.constant 0 : i32
    %c0_i32_0 = arith.constant 0 : i32
    %c0_i32_1 = arith.constant 0 : i32
    return %arg0, %c0_i32, %c0_i32_0 : i32, i32, i32
  }
  func.func @transform_2(%arg0: i32) -> (i32, i32, i32) {
    %c0_i32 = arith.constant 0 : i32
    %c0_i32_0 = arith.constant 0 : i32
    %c0_i32_1 = arith.constant 0 : i32
    return %arg0, %c0_i32, %c0_i32_0 : i32, i32, i32
  }
  func.func @transform_3(%arg0: i32) -> (i32, i32) {
    %c0_i32 = arith.constant 0 : i32
    %c0_i32_0 = arith.constant 0 : i32
    %c0_i32_1 = arith.constant 0 : i32
    return %c0_i32, %c0_i32_0 : i32, i32
  }
  func.func @transform_4(%arg0: i32) -> (i32, i32, i32) {
    %c0_i32 = arith.constant 0 : i32
    %c0_i32_0 = arith.constant 0 : i32
    %c0_i32_1 = arith.constant 0 : i32
    %c0_i32_2 = arith.constant 0 : i32
    return %c0_i32, %c0_i32_0, %c0_i32_1 : i32, i32, i32
  }
  func.func @transform_5(%arg0: i32) -> i32 {
    %c0_i32 = arith.constant 0 : i32
    %c0_i32_0 = arith.constant 0 : i32
    return %c0_i32 : i32
  }
  func.func @transform_6(%arg0: i32) -> (i32, i32, i32) {
    %c0_i32 = arith.constant 0 : i32
    %c0_i32_0 = arith.constant 0 : i32
    %c0_i32_1 = arith.constant 0 : i32
    return %arg0, %c0_i32, %c0_i32_0 : i32, i32, i32
  }
  func.func @transform_7(%arg0: i32) -> (i32, i32, i32) {
    %c0_i32 = arith.constant 0 : i32
    %c0_i32_0 = arith.constant 0 : i32
    %c0_i32_1 = arith.constant 0 : i32
    return %arg0, %c0_i32, %c0_i32_0 : i32, i32, i32
  }
}

</mosaic_0001>

<bundles_post_ra>
// kernel: hgat_layer.1
= control target key start
LH: loop header
LB: loop body
LE: loop exit
PB: predicated region body
PF: predicated region fallthrough
CT: control target
= control target key end

     0   :  { %13 = vsyncpa [#allocation3], 0  ;;  %s1194_s0 = inlined_call_operand.hbm [shape: f32[2,8,32], index: 0, kind: input, shape index: {}, may-alias: {0,6}]   ;;  %s1195_s1 = inlined_call_operand.hbm [shape: f32[2,8,32], index: 1, kind: input, shape index: {}, may-alias: {1,7}]   ;;  %s1196_s2 = inlined_call_operand.vmem [shape: f32[2,2,8], index: 2, kind: input, shape index: {}]   ;;  %s1197_s3 = inlined_call_operand.vmem [shape: f32[8,32], index: 3, kind: input, shape index: {}]   ;;  %s1198_s4 = inlined_call_operand.vmem [shape: f32[2,32,32], index: 4, kind: input, shape index: {}]   ;;  %s1199_s5 = inlined_call_operand.vmem [shape: f32[2], index: 5, kind: input, shape index: {}]   ;;  %s1200_s6 = inlined_call_operand.hbm [shape: f32[2,8,32], index: 6, kind: output, shape index: {0}, may-alias: {0,6}]   ;;  %s1201_s7 = inlined_call_operand.hbm [shape: f32[2,8,32], index: 7, kind: output, shape index: {1}, may-alias: {1,7}]  }
   0x1   :  { %14 = vsyncpa [#allocation7], 0 }
   0x2   :  { %15 = vsyncpa [#allocation5], 0 }
   0x3   :  { %16 = vsyncpa [#allocation4], 0 }
   0x4   :  { %17 = vsyncpa [#allocation11], 0  ;;  %s924_s24 = smov [#allocation2]   ;;  %s814_s28 = scalar_lea.hbm %s1194_s0, 256 }
   0x5   :  { %s23_s25 = sshll.u32 %s924_s24, 4  ;;  %p815_p0 = scmp.ne.s32.totalorder %s1194_s0, %s814_s28  ;;  %s24_s25 = int_to_ptr.vmem [resolvable:$true] %s23_s25 }
   0x6   :  { %p818_p1 = scmp.lt.u32.totalorder %s814_s28, %s1194_s0 }
   0x8   :  { %p820_p2 = pnand %p818_p1, %p815_p0 }
   0xa   :  { %823 = shalt.err (!%p820_p2)
}
   0xb   :  { %s824_s10 = scalar_lea.vmem %s24_s25, 256  ;;  %p829_p4 = scmp.lt.s32.totalorder %s24_s25, %s24_s25 }
   0xc   :  { %p825_p3 = scmp.ne.s32.totalorder %s24_s25, %s824_s10  ;;  %p830_p5 = scmp.lt.s32.totalorder %s824_s10, %s824_s10 }
   0xe   :  { %p831_p6 = por %p830_p5, %p829_p4 }
  0x10   :  { %p832_p7 = pnand %p831_p6, %p825_p3 }
  0x12   :  { %835 = shalt.err (!%p832_p7)
}
  0x13   :  { %s925_s11 = smov 128   ;;  %s926_s12 = smov 8  }
  0x14   :  { %29 = dma.hbm_to_vmem [thread:$0]  %s1194_s0, 256, %s24_s25, [#allocation3], %s925_s11, %s925_s11, %s926_s12  }
  0x15   :  { %s927_s15 = smov [#allocation6]   ;;  %s54_s19 = sshll.u32 %s1199_s5, 4  ;;  %s55_s19 = int_to_ptr.vmem [resolvable:$true] %s54_s19 }
  0x16   :  { %s35_s16 = sshll.u32 %s927_s15, 4  ;;  %s836_s22 = scalar_lea.hbm %s1195_s1, 256  ;;  %s36_s16 = int_to_ptr.vmem [resolvable:$true] %s35_s16 }
  0x17   :  { %p837_p8 = scmp.ne.s32.totalorder %s1195_s1, %s836_s22  ;;  %p840_p9 = scmp.lt.u32.totalorder %s836_s22, %s1195_s1 }
  0x19   :  { %p842_p10 = pnand %p840_p9, %p837_p8 }
  0x1b   :  { %845 = shalt.err (!%p842_p10)
}
  0x1c   :  { %s846_s0 = scalar_lea.vmem %s36_s16, 256  ;;  %p851_p12 = scmp.lt.s32.totalorder %s36_s16, %s36_s16 }
  0x1d   :  { %p847_p11 = scmp.ne.s32.totalorder %s36_s16, %s846_s0  ;;  %p852_p13 = scmp.lt.s32.totalorder %s846_s0, %s846_s0 }
  0x1f   :  { %p853_p0 = por %p852_p13, %p851_p12 }
  0x21   :  { %p854_p1 = pnand %p853_p0, %p847_p11 }
  0x23   :  { %857 = shalt.err (!%p854_p1)
}
  0x24   :  { %41 = dma.hbm_to_vmem [thread:$0]  %s1195_s1, 256, %s36_s16, [#allocation7], %s925_s11, %s925_s11, %s926_s12  }
  0x25   :  { %s858_s28 = scalar_lea.vmem %s55_s19, 16  ;;  %p863_p3 = scmp.lt.s32.totalorder %s55_s19, %s55_s19 }
  0x26   :  { %p859_p2 = scmp.ne.s32.totalorder %s55_s19, %s858_s28  ;;  %p864_p4 = scmp.lt.s32.totalorder %s858_s28, %s858_s28 }
  0x28   :  { %p865_p5 = por %p864_p4, %p863_p3 }
  0x2a   :  { %p866_p6 = pnand %p865_p5, %p859_p2 }
  0x2c   :  { %869 = shalt.err (!%p866_p6)
}
  0x2d   :  { %s928_s29 = smov [#allocation8]  }
  0x2e   :  { %57 = dma.vmem_to_smem %s55_s19, 16, %s928_s29, [#allocation5]  }
  0x2f   :  { %914 = dma.done.wait [#allocation3], 256  }
  0x30   :  { %915 = vsyncadd [#allocation3], 4294967040 }
  0x31   :  { %916 = dma.done.wait [#allocation7], 256  }
  0x32   :  { %917 = vsyncadd [#allocation7], 4294967040 }
  0x33   :  { %918 = dma.done.wait [#allocation5], 16  }
  0x34   :  { %919 = vsyncadd [#allocation5], 4294967280 }
  0x35   :  { %67 = sfence }
  0x36   :  { %v73_v0 = vlaneseq  ;;  %v1014_v2 = vld [vmem:[%s1197_s3] sm:$0xff]  ;;  %v1019_v4 = vld [vmem:[#allocation6] sm:$0xff]  ;;  %v1021_v5 = vld [vmem:[#allocation6 + $0x8] sm:$0xff]  ;;  %vm79_vm0 = vcmask 261120   ;;  %vm98_vm1 = vcmask 1041409   ;;  %vm101_vm2 = vcmask 58368  }
  0x37   :  { %v929_v19 = vmov 0   ;;  %v183_v42 = vld [vmem:[%s1198_s4] sm:$0xff]  ;;  %v184_v43 = vld [vmem:[%s1198_s4 + $0x8] sm:$0xff]  ;;  %v930_v45 = vmov 0.0|0.0   ;;  %v185_v46 = vld [vmem:[%s1198_s4 + $0x10] sm:$0xff]  ;;  %vm931_vm3 = vmmov 0  }
  0x38   :  { %v1009_v1 = vshrl.u32 %v73_v0, 7  ;;  %v89_v11 = vand.u32 127, %v73_v0  ;;  %785 = vset.pattern.permute.xlu0 %v929_v19  ;;  %784 = vset.pattern.permute.xlu1 %v929_v19  ;;  %v761_v44 = vpack.c.bf16 %v184_v43, %v183_v42  ;;  %v186_v47 = vld [vmem:[%s1198_s4 + $0x18] sm:$0xff]  ;;  %v932_v49 = vmov 0.0   ;;  %s300_s21 = sld [smem:[#allocation8]] }
  0x39   :  { %760 = vmatprep.subr.bf16.mxu0 %v930_v45  ;;  %766 = vmatprep.subr.bf16.mxu1 %v930_v45  ;;  %v764_v48 = vpack.c.bf16 %v186_v47, %v185_v46  ;;  %vm271_vm4 = vcmask 254976  }
  0x3a   :  { %v1017_v3 = vsub.s32 0, %v1009_v1  ;;  %v1030_v13 = vsub.s32 %v89_v11, %v1009_v1  ;;  %v1037_v20 = vsub.s32 1, %v1009_v1  ;;  %762 = vmatpush3.bf16.msra.mxu0 %v761_v44  ;;  %746 = vmatprep.mubr.msk.f32.mxu0 %vm931_vm3, %v932_v49  ;;  %v933_v44 = vmov 1966171168  }
  0x3b   :  { %763 = vmatprep.subr.bf16.mxu0 %v930_v45  ;;  %757 = vmatprep.mubr.msk.f32.mxu1 %vm931_vm3, %v932_v49  ;;  %v318_v46 = vunpack.c.l.s4 %v933_v44 }
  0x3c   :  { %v76_v6 = vrot.slane %v1014_v2, %v1017_v3 }
  0x3e   :  { %v77_v7 = vmul.f32 %v76_v6, %v1019_v4  ;;  %v78_v8 = vmul.f32 %v76_v6, %v1021_v5  ;;  %765 = vmatpush3.bf16.msra.mxu0 %v764_v48  ;;  %v319_v48 = vunpack.c.0.s8 %v318_v46 }
  0x40   :  { %v80_v9 = vsel %vm79_vm0, %v77_v7, 0.0  ;;  %v83_v10 = vsel %vm79_vm0, %v78_v8, 0.0  ;;  %v1089_v49 = vsub.s32 %v319_v48, %v1009_v1 }
  0x41   :  { %81 = vadd.xlane.f32.xlu0 %v80_v9 }
  0x45   :  { %84 = vadd.xlane.f32.xlu0 %v83_v10  ;;  %v277_v10 = vsub.s32 3, %v1009_v1 }
  0x47   :  { %v278_v11 = vrot.slane %v1014_v2, %v277_v10 }
  0xce   :  { %v82_v12 = vpop.xlane.xlu0 %81 }
  0xcf   :  { %v93_v15 = vrot.slane %v82_v12, %v1030_v13 }
  0xd2   :  { %v85_v14 = vpop.xlane.xlu0 %84 }
  0xd3   :  { %v97_v16 = vrot.slane %v85_v14, %v1030_v13 }
  0xd5   :  { %v99_v17 = vsel %vm98_vm1, %v97_v16, %v93_v15  ;;  %v268_v16 = vsub.s32 2, %v1009_v1 }
  0xd6   :  { %v102_v18 = vsel %vm101_vm2, %v99_v17, -inf  ;;  %v190_v17 = vrot.slane %v1014_v2, %v1037_v20 }
  0xd7   :  { %103 = vmax.xlane.f32.xlu1 %v102_v18  ;;  %v269_v18 = vrot.slane %v1014_v2, %v268_v16 }
 0x164   :  { %v104_v21 = vpop.xlane.xlu1 %103 }
 0x165   :  { %v109_v22 = vrot.slane %v104_v21, %v1017_v3  ;;  %v113_v23 = vrot.slane %v104_v21, %v1037_v20  ;;  %v69_v21 = vld [vmem:[#allocation2 + $0x8] sm:$0xff] }
 0x167   :  { %v116_v24 = vsub.f32 %v82_v12, %v109_v22  ;;  %v117_v25 = vsub.f32 %v85_v14, %v113_v23  ;;  %v68_v12 = vld [vmem:[#allocation2] sm:$0xff] }
 0x168   :  { %v279_v14 = vmul.f32 %v278_v11, %v68_v12 }
 0x169   :  { %v118_v26 = vmul.f32 1.442695, %v116_v24  ;;  %v120_v27 = vmul.f32 1.442695, %v117_v25  ;;  %v280_v25 = vmul.f32 %v278_v11, %v69_v21 }
 0x16a   :  { %v281_v15 = vsel %vm79_vm0, %v279_v14, 0.0 }
 0x16b   :  { %786 = vpow2.f32 %v118_v26 }
 0x16c   :  { %788 = vpow2.f32 %v120_v27  ;;  %v284_v27 = vsel %vm79_vm0, %v280_v25, 0.0 }
 0x175   :  { %v787_v28 = vpop.eup %786 }
 0x176   :  { %v789_v29 = vpop.eup %788  ;;  %125 = vperm.xlu1 %784, %v787_v28  }
 0x177   :  { %128 = vperm.xlu0 %785, %v789_v29  }
 0x1f5   :  { %v126_v30 = vpop.permute.xlu1 %125 }
 0x1f6   :  { %v129_v31 = vpop.permute.xlu0 %128  ;;  %v133_v32 = vrot.slane %v126_v30, %v1030_v13  ;;  %v358_v30 = vld [vmem:[%s1196_s2 + $0x2] sm:$0x3] }
 0x1f7   :  { %v137_v33 = vrot.slane %v129_v31, %v1030_v13  ;;  %v383_v31 = vrot.slane %v358_v30, %v1017_v3  ;;  %v401_v16 = vrot.slane %v358_v30, %v1037_v20 }
 0x1f9   :  { %v138_v34 = vsel %vm98_vm1, %v137_v33, %v133_v32 }
 0x1fa   :  { %v140_v35 = vsel %vm101_vm2, %v138_v34, 0.0 }
 0x1fb   :  { %141 = vadd.xlane.f32.xlu1 %v140_v35 }
 0x288   :  { %v142_v36 = vpop.xlane.xlu1 %141 }
 0x289   :  { %790 = vrcp.f32 %v142_v36  ;;  %v301_v36 = vstv %s300_s21 }
 0x293   :  { %v791_v37 = vpop.eup %790 }
 0x294   :  { %v148_v38 = vrot.slane %v791_v37, %v1017_v3  ;;  %v152_v40 = vrot.slane %v791_v37, %v1037_v20 }
 0x296   :  { %v155_v39 = vmul.f32 %v787_v28, %v148_v38  ;;  %v156_v41 = vmul.f32 %v789_v29, %v152_v40  ;;  %v357_v28 = vld [vmem:[%s1196_s2] sm:$0x3] }
 0x297   :  { %v376_v29 = vrot.slane %v357_v28, %v1017_v3  ;;  %v394_v32 = vrot.slane %v357_v28, %v1037_v20 }
 0x298   :  { %159 = vperm.xlu0 %785, %v155_v39  }
 0x29c   :  { %164 = vperm.xlu0 %785, %v156_v41  }
 0x2bb   :  { %282 = vadd.xlane.f32.xlu0 %v281_v15 }
 0x2d1   :  { %396 = vbcast.lane.b32.xlu0 %v394_v32, 256 }
 0x317   :  { %v160_v50 = vpop.permute.xlu0 %159 }
 0x318   :  { %v167_v51 = vmul.f32 %v160_v50, %v1019_v4 }
 0x31a   :  { %v169_v52 = vsel %vm79_vm0, %v167_v51, 0.0 }
 0x31b   :  { %v170_v53 = vrot.slane %v169_v52, 4  ;;  %v165_v54 = vpop.permute.xlu0 %164 }
 0x31c   :  { %v168_v55 = vmul.f32 %v165_v54, %v1021_v5 }
 0x31d   :  { %v171_v56 = vadd.f32 %v170_v53, %v169_v52 }
 0x31e   :  { %v176_v57 = vsel %vm79_vm0, %v168_v55, 0.0 }
 0x31f   :  { %v172_v58 = vrot.slane %v171_v56, 2  ;;  %v177_v59 = vrot.slane %v176_v57, 4 }
 0x321   :  { %v173_v60 = vadd.f32 %v172_v58, %v171_v56  ;;  %v178_v61 = vadd.f32 %v177_v59, %v176_v57  ;;  %v361_v58 = vsub.s32 4, %v1009_v1 }
 0x323   :  { %v179_v62 = vrot.slane %v178_v61, 2  ;;  %v174_v63 = vrot.slane %v173_v60, 1 }
 0x325   :  { %v180_v0 = vadd.f32 %v179_v62, %v178_v61  ;;  %v175_v7 = vadd.f32 %v174_v63, %v173_v60  ;;  %v351_v60 = vmul.f32 2.0, %v68_v12  ;;  %v352_v63 = vmul.f32 2.0, %v69_v21 }
 0x327   :  { %v181_v6 = vrot.slane %v180_v0, 1 }
 0x329   :  { %v182_v8 = vadd.f32 %v181_v6, %v180_v0  ;;  %v362_v6 = vrot.slane %v1014_v2, %v361_v58 }
 0x32b   :  { %v193_v9 = vsel %vm98_vm1, %v182_v8, %v175_v7 }
 0x32c   :  { %747 = vmatmul.mubr.msk.f32.vlgmr.msra.gmra.mrb[0].mxu0 %vm79_vm0, %v193_v9 }
 0x348   :  { %v283_v34 = vpop.xlane.xlu0 %282 }
 0x34c   :  { %v397_v21 = vpop.permute.xlu0 %396 }
 0x3ff   :  { %v262_v19 = vpop.f32.mrb[0].mxu0 }
 0x400   :  { %v263_v22 = vadd.f32 %v262_v19, %v190_v17  ;;  %v748_v23 = vpop.f32.mrb[1].mxu0 }
 0x402   :  { %v270_v24 = vmul.f32 %v269_v18, %v263_v22  ;;  %v323_v53 = vrot.slane %v263_v22, %v1089_v49 }
 0x404   :  { %v272_v26 = vsel %vm271_vm4, %v270_v24, 0.0  ;;  %v324_v55 = vcombine.high %v323_v53, %v323_v53  ;;  %v331_v56 = vrot.slane %v323_v53, %v1089_v49 }
 0x405   :  { %273 = vadd.xlane.f32.xlu1 %v272_v26 }
 0x406   :  { %v338_v57 = vrot.slane %v324_v55, %v1089_v49  ;;  %v342_v59 = vrot.slane %v331_v56, %v1017_v3 }
 0x408   :  { %v346_v62 = vrot.slane %v338_v57, %v1017_v3  ;;  %v721_v57 = vld [vmem:[%s1198_s4 + $0x28] sm:$0xff] }
 0x409   :  { %285 = vadd.xlane.f32.xlu1 %v284_v27 }
 0x41a   :  { %378 = vbcast.lane.b32.xlu1 %v376_v29, 256 }
 0x41e   :  { %385 = vbcast.lane.b32.xlu1 %v383_v31, 256 }
 0x492   :  { %v274_v33 = vpop.xlane.xlu1 %273 }
 0x493   :  { %v291_v35 = vrot.slane %v274_v33, %v1017_v3  ;;  %v295_v37 = vrot.slane %v274_v33, %v1037_v20 }
 0x495   :  { %v298_v38 = vadd.f32 %v291_v35, %v283_v34 }
 0x496   :  { %v286_v39 = vpop.xlane.xlu1 %285 }
 0x497   :  { %v302_v40 = vadd.f32 %v301_v36, %v298_v38  ;;  %v299_v41 = vadd.f32 %v295_v37, %v286_v39 }
 0x499   :  { %v718_v42 = vmul.f32 -1.442695, %v302_v40  ;;  %v303_v43 = vadd.f32 %v301_v36, %v299_v41 }
 0x49a   :  { %v379_v17 = vpop.permute.xlu1 %378 }
 0x49b   :  { %792 = vpow2.f32 %v718_v42  ;;  %v719_v47 = vmul.f32 -1.442695, %v303_v43 }
 0x49d   :  { %794 = vpow2.f32 %v719_v47 }
 0x49e   :  { %v386_v18 = vpop.permute.xlu1 %385 }
 0x4a5   :  { %v793_v50 = vpop.eup %792 }
 0x4a6   :  { %v310_v51 = vadd.f32 1.0, %v793_v50 }
 0x4a7   :  { %v795_v52 = vpop.eup %794 }
 0x4a8   :  { %796 = vrcp.f32 %v310_v51  ;;  %v311_v54 = vadd.f32 1.0, %v795_v52 }
 0x4aa   :  { %798 = vrcp.f32 %v311_v54 }
 0x4b2   :  { %v797_v61 = vpop.eup %796 }
 0x4b3   :  { %v349_v0 = vmul.f32 %v797_v61, %v342_v59  ;;  %v722_v59 = vld [vmem:[%s1198_s4 + $0x30] sm:$0xff] }
 0x4b4   :  { %v799_v7 = vpop.eup %798 }
 0x4b5   :  { %v1098_v8 = vadd.f32 %v351_v60, %v349_v0  ;;  %v350_v9 = vmul.f32 %v799_v7, %v346_v62  ;;  %v723_v60 = vld [vmem:[%s1198_s4 + $0x38] sm:$0xff] }
 0x4b6   :  { %v770_v61 = vpack.c.bf16 %v723_v60, %v722_v59 }
 0x4b7   :  { %v363_v10 = vmul.f32 %v362_v6, %v1098_v8  ;;  %355 = vst.msk [vmem:[#allocation9] sm:$0xff] %vm79_vm0, %v1098_v8  ;;  %v1103_v11 = vadd.f32 %v352_v63, %v350_v9 }
 0x4b9   :  { %v365_v12 = vsel %vm79_vm0, %v363_v10, 0.0  ;;  %v364_v14 = vmul.f32 %v362_v6, %v1103_v11  ;;  %356 = vst.msk [vmem:[#allocation9 + $0x8] sm:$0xff] %vm79_vm0, %v1103_v11 }
 0x4ba   :  { %366 = vadd.xlane.f32.xlu1 %v365_v12 }
 0x4bb   :  { %v368_v15 = vsel %vm79_vm0, %v364_v14, 0.0 }
 0x4be   :  { %369 = vadd.xlane.f32.xlu1 %v368_v15 }
 0x4cf   :  { %403 = vbcast.lane.b32.xlu1 %v401_v16, 256 }
 0x547   :  { %v367_v19 = vpop.xlane.xlu1 %366 }
 0x548   :  { %v389_v22 = vmul.f32 %v379_v17, %v367_v19 }
 0x54a   :  { %v407_v23 = vadd.f32 %v397_v21, %v389_v22 }
 0x54b   :  { %v370_v24 = vpop.xlane.xlu1 %369 }
 0x54c   :  { %412 = vperm.xlu1 %784, %v407_v23   ;;  %v390_v25 = vmul.f32 %v386_v18, %v370_v24 }
 0x54f   :  { %v404_v26 = vpop.permute.xlu1 %403 }
 0x550   :  { %v408_v27 = vadd.f32 %v404_v26, %v390_v25 }
 0x552   :  { %415 = vperm.xlu1 %784, %v408_v27  }
 0x5cb   :  { %v413_v28 = vpop.permute.xlu1 %412 }
 0x5cc   :  { %v420_v31 = vrot.slane %v413_v28, %v1030_v13  ;;  %v594_v28 = vsub.s32 6, %v1009_v1 }
 0x5d1   :  { %v416_v29 = vpop.permute.xlu1 %415 }
 0x5d2   :  { %v424_v32 = vrot.slane %v416_v29, %v1030_v13 }
 0x5d4   :  { %v425_v30 = vsel %vm98_vm1, %v424_v32, %v420_v31  ;;  %v595_v31 = vrot.slane %v1014_v2, %v594_v28 }
 0x5d5   :  { %v427_v33 = vsel %vm101_vm2, %v425_v30, -inf }
 0x5d6   :  { %428 = vmax.xlane.f32.xlu1 %v427_v33 }
 0x663   :  { %v429_v34 = vpop.xlane.xlu1 %428 }
 0x664   :  { %v434_v35 = vrot.slane %v429_v34, %v1017_v3  ;;  %v438_v36 = vrot.slane %v429_v34, %v1037_v20 }
 0x666   :  { %v441_v37 = vsub.f32 %v407_v23, %v434_v35  ;;  %v442_v38 = vsub.f32 %v408_v27, %v438_v36  ;;  %v515_v27 = vsub.s32 5, %v1009_v1 }
 0x668   :  { %v443_v39 = vmul.f32 1.442695, %v441_v37  ;;  %v445_v40 = vmul.f32 1.442695, %v442_v38  ;;  %v516_v29 = vrot.slane %v1014_v2, %v515_v27 }
 0x66a   :  { %800 = vpow2.f32 %v443_v39 }
 0x66b   :  { %802 = vpow2.f32 %v445_v40 }
 0x674   :  { %v801_v41 = vpop.eup %800 }
 0x675   :  { %450 = vperm.xlu0 %785, %v801_v41   ;;  %v803_v42 = vpop.eup %802 }
 0x679   :  { %453 = vperm.xlu0 %785, %v803_v42  }
 0x6f4   :  { %v451_v43 = vpop.permute.xlu0 %450 }
 0x6f5   :  { %v458_v46 = vrot.slane %v451_v43, %v1030_v13 }
 0x6f8   :  { %v454_v44 = vpop.permute.xlu0 %453 }
 0x6f9   :  { %v462_v47 = vrot.slane %v454_v44, %v1030_v13  ;;  %v720_v13 = vld [vmem:[%s1198_s4 + $0x20] sm:$0xff]  ;;  %s934_s4 = smov [#allocation9]  }
 0x6fa   :  { %v767_v58 = vpack.c.bf16 %v721_v57, %v720_v13  ;;  %s687_s25 = sshll.u32 %s934_s4, 4  ;;  %s688_s25 = int_to_ptr.vmem [resolvable:$true] %s687_s25 }
 0x6fb   :  { %v463_v48 = vsel %vm98_vm1, %v462_v47, %v458_v46  ;;  %s870_s28 = scalar_lea.vmem %s688_s25, 256  ;;  %p875_p8 = scmp.lt.s32.totalorder %s688_s25, %s688_s25 }
 0x6fc   :  { %v465_v50 = vsel %vm101_vm2, %v463_v48, 0.0  ;;  %768 = vmatpush3.bf16.msra.mxu1 %v767_v58  ;;  %p871_p7 = scmp.ne.s32.totalorder %s688_s25, %s870_s28  ;;  %p876_p9 = scmp.lt.s32.totalorder %s870_s28, %s870_s28 }
 0x6fd   :  { %466 = vadd.xlane.f32.xlu0 %v465_v50  ;;  %769 = vmatprep.subr.bf16.mxu1 %v930_v45 }
 0x6fe   :  { %p877_p10 = por %p876_p9, %p875_p8 }
 0x700   :  { %771 = vmatpush3.bf16.msra.mxu1 %v770_v61  ;;  %p878_p11 = pnand %p877_p10, %p871_p7 }
 0x78a   :  { %v467_v51 = vpop.xlane.xlu0 %466 }
 0x78b   :  { %804 = vrcp.f32 %v467_v51 }
 0x795   :  { %v805_v52 = vpop.eup %804 }
 0x796   :  { %v477_v53 = vrot.slane %v805_v52, %v1037_v20  ;;  %v473_v54 = vrot.slane %v805_v52, %v1017_v3 }
 0x798   :  { %v481_v55 = vmul.f32 %v803_v42, %v477_v53  ;;  %v480_v56 = vmul.f32 %v801_v41, %v473_v54 }
 0x79a   :  { %489 = vperm.xlu0 %785, %v481_v55   ;;  %484 = vperm.xlu1 %784, %v480_v56  }
 0x819   :  { %v490_v62 = vpop.permute.xlu0 %489  ;;  %v485_v63 = vpop.permute.xlu1 %484 }
 0x81a   :  { %v493_v0 = vmul.f32 %v490_v62, %v1103_v11  ;;  %v492_v6 = vmul.f32 %v485_v63, %v1098_v8  ;;  %v602_v8 = vsub.s32 7, %v1009_v1 }
 0x81c   :  { %v501_v7 = vsel %vm79_vm0, %v493_v0, 0.0  ;;  %v494_v45 = vsel %vm79_vm0, %v492_v6, 0.0  ;;  %v603_v24 = vrot.slane %v1014_v2, %v602_v8 }
 0x81d   :  { %v502_v9 = vrot.slane %v501_v7, 4  ;;  %v495_v10 = vrot.slane %v494_v45, 4 }
 0x81e   :  { %v604_v25 = vmul.f32 %v603_v24, %v1019_v4  ;;  %v605_v35 = vmul.f32 %v603_v24, %v1021_v5 }
 0x81f   :  { %v503_v12 = vadd.f32 %v502_v9, %v501_v7  ;;  %v496_v14 = vadd.f32 %v495_v10, %v494_v45 }
 0x820   :  { %v606_v26 = vsel %vm79_vm0, %v604_v25, 0.0  ;;  %v609_v37 = vsel %vm79_vm0, %v605_v35, 0.0 }
 0x821   :  { %v504_v15 = vrot.slane %v503_v12, 2  ;;  %v497_v16 = vrot.slane %v496_v14, 2  ;;  %607 = vadd.xlane.f32.xlu0 %v606_v26 }
 0x823   :  { %v505_v17 = vadd.f32 %v504_v15, %v503_v12  ;;  %v498_v18 = vadd.f32 %v497_v16, %v496_v14 }
 0x825   :  { %v506_v19 = vrot.slane %v505_v17, 1  ;;  %v499_v21 = vrot.slane %v498_v18, 1 }
 0x827   :  { %v507_v22 = vadd.f32 %v506_v19, %v505_v17  ;;  %v500_v23 = vadd.f32 %v499_v21, %v498_v18 }
 0x829   :  { %v519_v11 = vsel %vm98_vm1, %v507_v22, %v500_v23 }
 0x82a   :  { %758 = vmatmul.mubr.msk.f32.vlgmr.msra.gmra.mrb[0].mxu1 %vm79_vm0, %v519_v11 }
 0x8fd   :  { %v588_v32 = vpop.f32.mrb[0].mxu1 }
 0x8fe   :  { %v589_v30 = vadd.f32 %v588_v32, %v516_v29  ;;  %v759_v33 = vpop.f32.mrb[1].mxu1 }
 0x900   :  { %v596_v34 = vmul.f32 %v595_v31, %v589_v30 }
 0x902   :  { %v597_v36 = vsel %vm271_vm4, %v596_v34, 0.0 }
 0x903   :  { %598 = vadd.xlane.f32.xlu1 %v597_v36 }
 0x907   :  { %610 = vadd.xlane.f32.xlu1 %v609_v37 }
 0x908   :  { %881 = shalt.err (!%p878_p11)
}
 0x909   :  { %s882_s30 = scalar_lea.hbm %s1200_s6, 256 }
 0x90a   :  { %p883_p12 = scmp.ne.s32.totalorder %s1200_s6, %s882_s30  ;;  %p886_p13 = scmp.lt.u32.totalorder %s882_s30, %s1200_s6 }
 0x90c   :  { %p888_p0 = pnand %p886_p13, %p883_p12 }
 0x90e   :  { %891 = shalt.err (!%p888_p0)
}
 0x90f   :  { %693 = dma.vmem_to_hbm [thread:$0]  %s688_s25, 256, %s1200_s6, [#allocation4], %s925_s11, %s925_s11, %s926_s12   ;;  %v608_v2 = vpop.xlane.xlu0 %607  ;;  %v648_v53 = vrot.slane %v589_v30, %v1089_v49  ;;  %v676_v57 = vmul.f32 2.0, %v1019_v4  ;;  %v677_v61 = vmul.f32 2.0, %v1021_v5 }
 0x910   :  { %s725_s15 = sld [smem:[#allocation8 + $0x1]]  ;;  %s935_s6 = smov [#allocation10]  }
 0x911   :  { %v649_v55 = vcombine.high %v648_v53, %v648_v53  ;;  %s699_s16 = sshll.u32 %s935_s6, 4  ;;  %s700_s16 = int_to_ptr.vmem [resolvable:$true] %s699_s16 }
 0x912   :  { %s892_s17 = scalar_lea.vmem %s700_s16, 256  ;;  %p897_p2 = scmp.lt.s32.totalorder %s700_s16, %s700_s16 }
 0x913   :  { %v663_v56 = vrot.slane %v649_v55, %v1089_v49  ;;  %p893_p1 = scmp.ne.s32.totalorder %s700_s16, %s892_s17  ;;  %p898_p3 = scmp.lt.s32.totalorder %s892_s17, %s892_s17 }
 0x915   :  { %v671_v59 = vrot.slane %v663_v56, %v1017_v3  ;;  %p899_p4 = por %p898_p3, %p897_p2 }
 0x916   :  { %v626_v39 = vstv %s725_s15 }
 0x917   :  { %p900_p5 = pnand %p899_p4, %p893_p1 }
 0x990   :  { %v599_v1 = vpop.xlane.xlu1 %598 }
 0x991   :  { %v616_v38 = vrot.slane %v599_v1, %v1017_v3  ;;  %v620_v40 = vrot.slane %v599_v1, %v1037_v20  ;;  %v656_v20 = vrot.slane %v648_v53, %v1089_v49 }
 0x993   :  { %v623_v41 = vadd.f32 %v616_v38, %v608_v2  ;;  %v667_v13 = vrot.slane %v656_v20, %v1017_v3 }
 0x994   :  { %v611_v42 = vpop.xlane.xlu1 %610 }
 0x995   :  { %v627_v43 = vadd.f32 %v626_v39, %v623_v41  ;;  %v624_v44 = vadd.f32 %v620_v40, %v611_v42 }
 0x997   :  { %v726_v46 = vmul.f32 -1.442695, %v627_v43  ;;  %v628_v47 = vadd.f32 %v626_v39, %v624_v44 }
 0x999   :  { %806 = vpow2.f32 %v726_v46  ;;  %v727_v48 = vmul.f32 -1.442695, %v628_v47 }
 0x99b   :  { %808 = vpow2.f32 %v727_v48 }
 0x9a3   :  { %v807_v50 = vpop.eup %806 }
 0x9a4   :  { %v635_v51 = vadd.f32 1.0, %v807_v50 }
 0x9a5   :  { %v809_v52 = vpop.eup %808 }
 0x9a6   :  { %810 = vrcp.f32 %v635_v51  ;;  %v636_v54 = vadd.f32 1.0, %v809_v52 }
 0x9a8   :  { %812 = vrcp.f32 %v636_v54 }
 0x9b0   :  { %v811_v58 = vpop.eup %810 }
 0x9b1   :  { %v674_v60 = vmul.f32 %v811_v58, %v667_v13 }
 0x9b2   :  { %v813_v62 = vpop.eup %812 }
 0x9b3   :  { %v675_v63 = vmul.f32 %v813_v62, %v671_v59  ;;  %v678_v0 = vadd.f32 %v676_v57, %v674_v60 }
 0x9b5   :  { %v679_v6 = vadd.f32 %v677_v61, %v675_v63  ;;  %680 = vst.msk [vmem:[#allocation10] sm:$0xff] %vm79_vm0, %v678_v0 }
 0x9b7   :  { %681 = vst.msk [vmem:[#allocation10 + $0x8] sm:$0xff] %vm79_vm0, %v679_v6 }
 0x9b8   :  { %903 = shalt.err (!%p900_p5)
}
 0x9b9   :  { %s904_s20 = scalar_lea.hbm %s1201_s7, 256 }
 0x9ba   :  { %p905_p6 = scmp.ne.s32.totalorder %s1201_s7, %s904_s20  ;;  %p908_p7 = scmp.lt.u32.totalorder %s904_s20, %s1201_s7 }
 0x9bc   :  { %p910_p8 = pnand %p908_p7, %p905_p6 }
 0x9be   :  { %913 = shalt.err (!%p910_p8)
}
 0x9bf   :  { %705 = dma.vmem_to_hbm [thread:$0]  %s700_s16, 256, %s1201_s7, [#allocation11], %s925_s11, %s925_s11, %s926_s12  }
 0x9c0   :  { %920 = dma.done.wait [#allocation4], 256  }
 0x9c1   :  { %921 = vsyncadd [#allocation4], 4294967040 }
 0x9c2   :  { %922 = dma.done.wait [#allocation11], 256  }
 0x9c3   :  { %923 = vsyncadd [#allocation11], 4294967040 }
 0x9c4   :  { %712 = vsyncpa [#allocation3], 1 }
 0x9c5   :  { %713 = vsyncpa [#allocation7], 1 }
 0x9c6   :  { %714 = vsyncpa [#allocation4], 1 }
 0x9c7   :  { %715 = vsyncpa [#allocation11], 1 }
 0x9c8   :  { %716 = vsyncpa [#allocation5], 1 }

</bundles_post_ra>
